<compile_context>
chip_gen: v7x
topology: tpu7x:2x2x1
jax: 0.10.0
libtpu: 0.0.40
codegen_flags: <defaults>
</compile_context>

<pallas_src>
import functools

import jax
import jax.numpy as jnp
from jax.experimental import pallas as pl
from jax.experimental.pallas import tpu as pltpu

LANE = 128


def _round_up(x: int, m: int) -> int:
    return ((x + m - 1) // m) * m


def _cdiv(a: int, b: int) -> int:
    return -(-a // b)


def sac_actor_kernel(obs_ref, w1_ref, b1_ref, w2_ref, b2_ref, wmu_ref, bmu_ref,
                     out_ref):
    cdtype = w1_ref.dtype  # MXU operand dtype (f32 or bf16); accumulate in f32.
    x = obs_ref[...]
    if x.dtype != cdtype:          # static (trace-time) dtype check
        x = x.astype(cdtype)
    # Layer 1: Linear + ReLU  (MXU matmul, f32 accumulate; bias/ReLU on VPU in f32)
    h = jnp.dot(x, w1_ref[...], preferred_element_type=jnp.float32)
    h = jnp.maximum(h + b1_ref[...], 0.0)
    # Layer 2: Linear + ReLU
    h = jnp.dot(h.astype(cdtype), w2_ref[...], preferred_element_type=jnp.float32)
    h = jnp.maximum(h + b2_ref[...], 0.0)
    # mu head (true act_dim wide, no padded lanes) + tanh squash, f32 store.
    mu = jnp.dot(h.astype(cdtype), wmu_ref[...], preferred_element_type=jnp.float32)
    out_ref[...] = jnp.tanh(mu + bmu_ref[...]).astype(out_ref.dtype)


def sac_actor_forward(obs, kparams, *, block_batch=1024):
    """obs: (B, obs_dim) f32 or bf16. kparams: padded params (see prepare_params).

    Returns (B, act_dim) f32 deterministic (tanh-squashed) actions.
    """
    w1, b1 = kparams["w1"], kparams["b1"]
    w2, b2 = kparams["w2"], kparams["b2"]
    wmu, bmu = kparams["wmu"], kparams["bmu"]

    B, obs_dim = obs.shape
    hid_p = w1.shape[1]
    act_dim = wmu.shape[1]          # true action dim (static Python int)

    # Tile selection: fewest fat tiles; force nb >= 2 for B > 128 so the
    # ("parallel",) batch axis keeps both v7x TensorCores busy; tb stays a
    # multiple of 8 sublanes so padding is bounded to < 8 rows per tile.
    nb = _cdiv(B, block_batch)
    if B > 128 and nb < 2:
        nb = 2
    tb = _round_up(_cdiv(B, nb), 8)
    b_pad = nb * tb
    if b_pad != B:
        obs = jnp.pad(obs, ((0, b_pad - B), (0, 0)))

    flops = 2 * b_pad * (obs_dim * hid_p + hid_p * hid_p + hid_p * act_dim)
    bytes_accessed = int(
        b_pad * obs_dim * obs.dtype.itemsize
        + sum(int(a.size) * a.dtype.itemsize for a in (w1, b1, w2, b2, wmu, bmu))
        + b_pad * act_dim * 4)
    cost = pl.CostEstimate(flops=int(flops),
                           transcendentals=int(b_pad * act_dim),
                           bytes_accessed=bytes_accessed)

    resident = lambda shape: pl.BlockSpec(shape, lambda i: (0, 0))

    out = pl.pallas_call(
        sac_actor_kernel,
        out_shape=jax.ShapeDtypeStruct((b_pad, act_dim), jnp.float32),
        grid=(nb,),
        in_specs=[
            pl.BlockSpec((tb, obs_dim), lambda i: (i, 0)),   # streamed obs tiles
            resident(w1.shape), resident(b1.shape),           # weights stay put
            resident(w2.shape), resident(b2.shape),
            resident(wmu.shape), resident(bmu.shape),
        ],
        out_specs=pl.BlockSpec((tb, act_dim), lambda i: (i, 0)),  # true-width store
        compiler_params=pltpu.CompilerParams(
            dimension_semantics=("parallel",)),                   # megacore on v7x
        cost_estimate=cost,
    )(obs, w1, b1, w2, b2, wmu, bmu)

    return out[:B] if b_pad != B else out


def make_params(key, obs_dim, hidden_dim, act_dim):
    """Logical (unpadded, f32) parameters matching SB3 SAC actor net_arch=[h, h]."""
    ks = jax.random.split(key, 6)
    s1 = 1.0 / jnp.sqrt(obs_dim)
    s2 = 1.0 / jnp.sqrt(hidden_dim)
    return {
        "w1": jax.random.uniform(ks[0], (obs_dim, hidden_dim), jnp.float32, -s1, s1),
        "b1": jax.random.uniform(ks[1], (hidden_dim,), jnp.float32, -s1, s1),
        "w2": jax.random.uniform(ks[2], (hidden_dim, hidden_dim), jnp.float32, -s2, s2),
        "b2": jax.random.uniform(ks[3], (hidden_dim,), jnp.float32, -s2, s2),
        "wmu": jax.random.uniform(ks[4], (hidden_dim, act_dim), jnp.float32, -s2, s2),
        "bmu": jax.random.uniform(ks[5], (act_dim,), jnp.float32, -s2, s2),
    }


def prepare_params(p, compute_dtype=jnp.float32):
    """One-time pad of the hidden dim to 128 lanes and cast of weights.

    Zero padding is exact: padded hidden lanes stay 0 through ReLU.  The mu
    head keeps its TRUE output width (act_dim) so the kernel never writes
    padded action lanes.  Biases stay f32 (added post f32 accumulation).
    """
    obs_dim, hidden = p["w1"].shape
    act_dim = p["wmu"].shape[1]
    hid_p = _round_up(hidden, LANE)

    def pad2(a, rows, cols):
        return jnp.pad(a, ((0, rows - a.shape[0]), (0, cols - a.shape[1])))

    return {
        "w1": pad2(p["w1"], obs_dim, hid_p).astype(compute_dtype),
        "b1": pad2(p["b1"][None, :], 1, hid_p).astype(jnp.float32),
        "w2": pad2(p["w2"], hid_p, hid_p).astype(compute_dtype),
        "b2": pad2(p["b2"][None, :], 1, hid_p).astype(jnp.float32),
        "wmu": pad2(p["wmu"], hid_p, act_dim).astype(compute_dtype),
        "bmu": p["bmu"][None, :].astype(jnp.float32),
    }


def reference_forward(obs, p):
    h = jnp.maximum(obs @ p["w1"] + p["b1"], 0.0)
    h = jnp.maximum(h @ p["w2"] + p["b2"], 0.0)
    return jnp.tanh(h @ p["wmu"] + p["bmu"])


if __name__ == "__main__":
    key = jax.random.PRNGKey(0)
    k_obs, k_obs2, k_par = jax.random.split(key, 3)

    batch, obs_dim, hidden_dim, act_dim = 8, 32, 64, 8
    obs = jax.random.normal(k_obs, (batch, obs_dim), jnp.float32)
    params = make_params(k_par, obs_dim, hidden_dim, act_dim)
    ref = reference_forward(obs, params)

    fwd = jax.jit(functools.partial(sac_actor_forward, block_batch=1024))

    # f32 MXU operands: tight tolerance check.
    kp_f32 = prepare_params(params, jnp.float32)
    out_f32 = jax.block_until_ready(fwd(obs, kp_f32))
    assert out_f32.shape == (batch, act_dim)
    assert jnp.allclose(out_f32, ref, atol=1e-5, rtol=1e-5), "f32 mismatch vs JAX reference"

    # bf16 MXU operands (v6e/v7x fast path), f32 accumulate: loose tolerance check.
    kp_bf16 = prepare_params(params, jnp.bfloat16)
    out_bf16 = jax.block_until_ready(fwd(obs, kp_bf16))
    assert out_bf16.shape == (batch, act_dim)
    assert jnp.allclose(out_bf16, ref, atol=3e-2, rtol=3e-2), "bf16 mismatch vs JAX reference"

    # Larger, awkward batch: exercises the multi-tile grid (nb>=2 megacore
    # split), bounded batch padding, and the row-slice path.
    batch2 = 300
    obs2 = jax.random.normal(k_obs2, (batch2, obs_dim), jnp.float32)
    ref2 = reference_forward(obs2, params)
    out2 = jax.block_until_ready(fwd(obs2, kp_f32))
    assert out2.shape == (batch2, act_dim)
    assert jnp.allclose(out2, ref2, atol=1e-5, rtol=1e-5), "multi-tile mismatch vs JAX reference"

    print("KERNEL_OK")
</pallas_src>

<mosaic_0001>
module attributes {stable_mosaic.version = 11 : i64} {
  func.func @sac_actor_kernel(%arg0: i32, %arg1: memref<8x32xf32, #tpu.memory_space<vmem>>, %arg2: memref<32x128xf32, #tpu.memory_space<vmem>>, %arg3: memref<1x128xf32, #tpu.memory_space<vmem>>, %arg4: memref<128x128xf32, #tpu.memory_space<vmem>>, %arg5: memref<1x128xf32, #tpu.memory_space<vmem>>, %arg6: memref<128x8xf32, #tpu.memory_space<vmem>>, %arg7: memref<1x8xf32, #tpu.memory_space<vmem>>, %arg8: memref<8x8xf32, #tpu.memory_space<vmem>>) attributes {dimension_semantics = [#tpu.dimension_semantics<parallel>], iteration_bounds = array<i64: 1>, scalar_prefetch = 0 : i64, scratch_operands = 0 : i64, tpu.core_type = #tpu.core_type<tc>, window_params = [{transform_indices = @transform_0, window_bounds = array<i64: 8, 32>}, {pipeline_mode = #tpu.pipeline_mode<synchronous>, transform_indices = @transform_1, window_bounds = array<i64: 32, 128>}, {pipeline_mode = #tpu.pipeline_mode<synchronous>, transform_indices = @transform_2, window_bounds = array<i64: 1, 128>}, {pipeline_mode = #tpu.pipeline_mode<synchronous>, transform_indices = @transform_3, window_bounds = array<i64: 128, 128>}, {pipeline_mode = #tpu.pipeline_mode<synchronous>, transform_indices = @transform_4, window_bounds = array<i64: 1, 128>}, {pipeline_mode = #tpu.pipeline_mode<synchronous>, transform_indices = @transform_5, window_bounds = array<i64: 128, 8>}, {pipeline_mode = #tpu.pipeline_mode<synchronous>, transform_indices = @transform_6, window_bounds = array<i64: 1, 8>}, {transform_indices = @transform_7, window_bounds = array<i64: 8, 8>}]} {
    %c0 = arith.constant 0 : index
    %c0_0 = arith.constant 0 : index
    %0 = vector.load %arg1[%c0, %c0_0] : memref<8x32xf32, #tpu.memory_space<vmem>>, vector<8x32xf32>
    %c0_1 = arith.constant 0 : index
    %c0_2 = arith.constant 0 : index
    %1 = vector.load %arg2[%c0_1, %c0_2] : memref<32x128xf32, #tpu.memory_space<vmem>>, vector<32x128xf32>
    %cst = arith.constant dense<0.000000e+00> : vector<8x128xf32>
    %2 = tpu.matmul %0, %1, %cst {dimension_numbers = #tpu.dot_dimension_numbers<[1], [0], [0], [1], [0, 0, 1, 1], [], []>} : vector<8x32xf32>, vector<32x128xf32>, vector<8x128xf32> -> vector<8x128xf32>
    %c0_3 = arith.constant 0 : index
    %c0_4 = arith.constant 0 : index
    %3 = vector.load %arg3[%c0_3, %c0_4] : memref<1x128xf32, #tpu.memory_space<vmem>>, vector<1x128xf32>
    %4 = vector.broadcast %3 : vector<1x128xf32> to vector<8x128xf32>
    %5 = arith.addf %2, %4 : vector<8x128xf32>
    %cst_5 = arith.constant 0.000000e+00 : f32
    %6 = vector.broadcast %cst_5 : f32 to vector<8x128xf32>
    %7 = arith.maximumf %5, %6 : vector<8x128xf32>
    %c0_6 = arith.constant 0 : index
    %c0_7 = arith.constant 0 : index
    %8 = vector.load %arg4[%c0_6, %c0_7] : memref<128x128xf32, #tpu.memory_space<vmem>>, vector<128x128xf32>
    %cst_8 = arith.constant dense<0.000000e+00> : vector<8x128xf32>
    %9 = tpu.matmul %7, %8, %cst_8 {dimension_numbers = #tpu.dot_dimension_numbers<[1], [0], [0], [1], [0, 0, 1, 1], [], []>} : vector<8x128xf32>, vector<128x128xf32>, vector<8x128xf32> -> vector<8x128xf32>
    %c0_9 = arith.constant 0 : index
    %c0_10 = arith.constant 0 : index
    %10 = vector.load %arg5[%c0_9, %c0_10] : memref<1x128xf32, #tpu.memory_space<vmem>>, vector<1x128xf32>
    %11 = vector.broadcast %10 : vector<1x128xf32> to vector<8x128xf32>
    %12 = arith.addf %9, %11 : vector<8x128xf32>
    %cst_11 = arith.constant 0.000000e+00 : f32
    %13 = vector.broadcast %cst_11 : f32 to vector<8x128xf32>
    %14 = arith.maximumf %12, %13 : vector<8x128xf32>
    %c0_12 = arith.constant 0 : index
    %c0_13 = arith.constant 0 : index
    %15 = vector.load %arg6[%c0_12, %c0_13] : memref<128x8xf32, #tpu.memory_space<vmem>>, vector<128x8xf32>
    %cst_14 = arith.constant dense<0.000000e+00> : vector<8x8xf32>
    %16 = tpu.matmul %14, %15, %cst_14 {dimension_numbers = #tpu.dot_dimension_numbers<[1], [0], [0], [1], [0, 0, 1, 1], [], []>} : vector<8x128xf32>, vector<128x8xf32>, vector<8x8xf32> -> vector<8x8xf32>
    %c0_15 = arith.constant 0 : index
    %c0_16 = arith.constant 0 : index
    %17 = vector.load %arg7[%c0_15, %c0_16] : memref<1x8xf32, #tpu.memory_space<vmem>>, vector<1x8xf32>
    %18 = vector.broadcast %17 : vector<1x8xf32> to vector<8x8xf32>
    %19 = arith.addf %16, %18 : vector<8x8xf32>
    %20 = math.tanh %19 : vector<8x8xf32>
    %c0_17 = arith.constant 0 : index
    %c0_18 = arith.constant 0 : index
    %21 = vector.load %arg8[%c0_17, %c0_18] : memref<8x8xf32, #tpu.memory_space<vmem>>, vector<8x8xf32>
    tpu.vector_store %arg8[%c0_17, %c0_18], %20 {strides = array<i32>} : memref<8x8xf32, #tpu.memory_space<vmem>>, vector<8x8xf32>,
    return
  }
  func.func @transform_0(%arg0: i32) -> (i32, i32) {
    %c0_i32 = arith.constant 0 : i32
    %c0_i32_0 = arith.constant 0 : i32
    return %arg0, %c0_i32 : i32, i32
  }
  func.func @transform_1(%arg0: i32) -> (i32, i32) {
    %c0_i32 = arith.constant 0 : i32
    %c0_i32_0 = arith.constant 0 : i32
    %c0_i32_1 = arith.constant 0 : i32
    return %c0_i32, %c0_i32_0 : i32, i32
  }
  func.func @transform_2(%arg0: i32) -> (i32, i32) {
    %c0_i32 = arith.constant 0 : i32
    %c0_i32_0 = arith.constant 0 : i32
    %c0_i32_1 = arith.constant 0 : i32
    return %c0_i32, %c0_i32_0 : i32, i32
  }
  func.func @transform_3(%arg0: i32) -> (i32, i32) {
    %c0_i32 = arith.constant 0 : i32
    %c0_i32_0 = arith.constant 0 : i32
    %c0_i32_1 = arith.constant 0 : i32
    return %c0_i32, %c0_i32_0 : i32, i32
  }
  func.func @transform_4(%arg0: i32) -> (i32, i32) {
    %c0_i32 = arith.constant 0 : i32
    %c0_i32_0 = arith.constant 0 : i32
    %c0_i32_1 = arith.constant 0 : i32
    return %c0_i32, %c0_i32_0 : i32, i32
  }
  func.func @transform_5(%arg0: i32) -> (i32, i32) {
    %c0_i32 = arith.constant 0 : i32
    %c0_i32_0 = arith.constant 0 : i32
    %c0_i32_1 = arith.constant 0 : i32
    return %c0_i32, %c0_i32_0 : i32, i32
  }
  func.func @transform_6(%arg0: i32) -> (i32, i32) {
    %c0_i32 = arith.constant 0 : i32
    %c0_i32_0 = arith.constant 0 : i32
    %c0_i32_1 = arith.constant 0 : i32
    return %c0_i32, %c0_i32_0 : i32, i32
  }
  func.func @transform_7(%arg0: i32) -> (i32, i32) {
    %c0_i32 = arith.constant 0 : i32
    %c0_i32_0 = arith.constant 0 : i32
    return %arg0, %c0_i32 : i32, i32
  }
}

</mosaic_0001>

<bundles_post_ra>
// kernel: sac_actor_forward.1
= control target key start
LH: loop header
LB: loop body
LE: loop exit
PB: predicated region body
PF: predicated region fallthrough
CT: control target
= control target key end

     0   :  { %12 = vsyncpa [#allocation3], 0  ;;  %s768_s0 = inlined_call_operand.vmem [shape: f32[8,32], index: 0, kind: input, shape index: {}]   ;;  %s769_s1 = inlined_call_operand.hbm [shape: f32[32,128], index: 1, kind: input, shape index: {}]   ;;  %s770_s2 = inlined_call_operand.vmem [shape: f32[1,128], index: 2, kind: input, shape index: {}]   ;;  %s771_s3 = inlined_call_operand.vmem [shape: f32[128,128], index: 3, kind: input, shape index: {}]   ;;  %s772_s4 = inlined_call_operand.vmem [shape: f32[1,128], index: 4, kind: input, shape index: {}]   ;;  %s773_s5 = inlined_call_operand.vmem [shape: f32[128,8], index: 5, kind: input, shape index: {}]   ;;  %s774_s6 = inlined_call_operand.vmem [shape: f32[1,8], index: 6, kind: input, shape index: {}]   ;;  %s775_s7 = inlined_call_operand.hbm [shape: f32[8,8], index: 7, kind: output, shape index: {}]  }
   0x1   :  { %13 = vsyncpa [#allocation4], 0  ;;  %s568_s24 = smov [#allocation2]   ;;  %s520_s28 = scalar_lea.hbm %s769_s1, 512 }
   0x2   :  { %s21_s25 = sshll.u32 %s568_s24, 4  ;;  %p521_p0 = scmp.ne.s32.totalorder %s769_s1, %s520_s28  ;;  %s22_s25 = int_to_ptr.vmem [resolvable:$true] %s21_s25 }
   0x3   :  { %p524_p1 = scmp.lt.u32.totalorder %s520_s28, %s769_s1 }
   0x5   :  { %p526_p2 = pnand %p524_p1, %p521_p0 }
   0x7   :  { %529 = shalt.err (!%p526_p2)
}
   0x8   :  { %s530_s10 = scalar_lea.vmem %s22_s25, 512  ;;  %p535_p4 = scmp.lt.s32.totalorder %s22_s25, %s22_s25 }
   0x9   :  { %p531_p3 = scmp.ne.s32.totalorder %s22_s25, %s530_s10  ;;  %p536_p5 = scmp.lt.s32.totalorder %s530_s10, %s530_s10 }
   0xb   :  { %p537_p6 = por %p536_p5, %p535_p4 }
   0xd   :  { %p538_p7 = pnand %p537_p6, %p531_p3 }
   0xf   :  { %541 = shalt.err (!%p538_p7)
}
  0x10   :  { %s569_s11 = smov 128   ;;  %s570_s12 = smov 8  }
  0x11   :  { %27 = dma.hbm_to_vmem [thread:$0]  %s769_s1, 512, %s22_s25, [#allocation3], %s569_s11, %s569_s11, %s570_s12  }
  0x12   :  { %564 = dma.done.wait [#allocation3], 512  }
  0x13   :  { %565 = vsyncadd [#allocation3], 4294966784  ;;  %v571_v0 = vmov 0.0|0.0   ;;  %vm572_vm0 = vmmov 0   ;;  %v573_v1 = vmov 0.0   ;;  %v42_v2 = vld [vmem:[#allocation2] sm:$0xff] }
  0x14   :  { %457 = vmatprep.subr.bf16.mxu0 %v571_v0  ;;  %384 = vmatprep.mubr.msk.f32.mxu0 %vm572_vm0, %v573_v1  ;;  %v43_v3 = vld [vmem:[#allocation2 + $0x8] sm:$0xff]  ;;  %v44_v4 = vld [vmem:[#allocation2 + $0x10] sm:$0xff]  ;;  %v45_v6 = vld [vmem:[#allocation2 + $0x18] sm:$0xff]  ;;  %vm53_vm1 = vcmask 261120   ;;  %vm316_vm2 = vcmask 64512  }
  0x15   :  { %463 = vmatprep.subr.bf16.mxu1 %v571_v0  ;;  %419 = vmatprep.mubr.msk.f32.mxu1 %vm572_vm0, %v573_v1  ;;  %v458_v5 = vpack.c.bf16 %v43_v3, %v42_v2  ;;  %v128_v7 = vld [vmem:[%s771_s3] sm:$0xff]  ;;  %v129_v8 = vld [vmem:[%s771_s3 + $0x8] sm:$0xff]  ;;  %v130_v9 = vld [vmem:[%s771_s3 + $0x10] sm:$0xff]  ;;  %v461_v11 = vpack.c.bf16 %v45_v6, %v44_v4 }
  0x16   :  { %v131_v10 = vld [vmem:[%s771_s3 + $0x18] sm:$0xff]  ;;  %v464_v12 = vpack.c.bf16 %v129_v8, %v128_v7  ;;  %v132_v14 = vld [vmem:[%s771_s3 + $0x20] sm:$0xff]  ;;  %v133_v15 = vld [vmem:[%s771_s3 + $0x28] sm:$0xff] }
  0x17   :  { %459 = vmatpush3.bf16.msra.mxu0 %v458_v5  ;;  %v467_v13 = vpack.c.bf16 %v131_v10, %v130_v9  ;;  %v41_v16 = vld [vmem:[%s768_s0] sm:$0xff]  ;;  %v470_v17 = vpack.c.bf16 %v133_v15, %v132_v14  ;;  %v134_v18 = vld [vmem:[%s771_s3 + $0x30] sm:$0xff]  ;;  %v135_v19 = vld [vmem:[%s771_s3 + $0x38] sm:$0xff] }
  0x18   :  { %460 = vmatprep.subr.bf16.mxu0 %v571_v0  ;;  %465 = vmatpush3.bf16.msra.mxu1 %v464_v12  ;;  %v473_v20 = vpack.c.bf16 %v135_v19, %v134_v18  ;;  %v136_v21 = vld [vmem:[%s771_s3 + $0x40] sm:$0xff]  ;;  %v137_v22 = vld [vmem:[%s771_s3 + $0x48] sm:$0xff]  ;;  %v138_v24 = vld [vmem:[%s771_s3 + $0x50] sm:$0xff] }
  0x19   :  { %466 = vmatprep.subr.bf16.mxu1 %v571_v0  ;;  %v476_v23 = vpack.c.bf16 %v137_v22, %v136_v21  ;;  %v139_v25 = vld [vmem:[%s771_s3 + $0x58] sm:$0xff]  ;;  %v140_v27 = vld [vmem:[%s771_s3 + $0x60] sm:$0xff]  ;;  %v141_v28 = vld [vmem:[%s771_s3 + $0x68] sm:$0xff] }
  0x1a   :  { %v479_v26 = vpack.c.bf16 %v139_v25, %v138_v24  ;;  %v482_v29 = vpack.c.bf16 %v141_v28, %v140_v27  ;;  %v142_v30 = vld [vmem:[%s771_s3 + $0x70] sm:$0xff]  ;;  %v143_v31 = vld [vmem:[%s771_s3 + $0x78] sm:$0xff]  ;;  %v222_v33 = vld [vmem:[%s773_s5] sm:$0xff] }
  0x1b   :  { %462 = vmatpush3.bf16.msra.mxu0 %v461_v11  ;;  %v485_v32 = vpack.c.bf16 %v143_v31, %v142_v30  ;;  %v223_v34 = vld [vmem:[%s773_s5 + $0x8] sm:$0xff]  ;;  %v224_v35 = vld [vmem:[%s773_s5 + $0x10] sm:$0xff]  ;;  %v225_v37 = vld [vmem:[%s773_s5 + $0x18] sm:$0xff] }
  0x1c   :  { %487 = vmatprep.subr.bf16.mxu0 %v571_v0  ;;  %468 = vmatpush3.bf16.msra.mxu1 %v467_v13  ;;  %v488_v36 = vpack.c.bf16 %v223_v34, %v222_v33  ;;  %v491_v38 = vpack.c.bf16 %v225_v37, %v224_v35  ;;  %v226_v39 = vld [vmem:[%s773_s5 + $0x20] sm:$0xff]  ;;  %v227_v40 = vld [vmem:[%s773_s5 + $0x28] sm:$0xff]  ;;  %v228_v42 = vld [vmem:[%s773_s5 + $0x30] sm:$0xff] }
  0x1d   :  { %469 = vmatprep.subr.bf16.mxu1 %v571_v0  ;;  %v494_v41 = vpack.c.bf16 %v227_v40, %v226_v39  ;;  %v229_v43 = vld [vmem:[%s773_s5 + $0x38] sm:$0xff]  ;;  %v230_v45 = vld [vmem:[%s773_s5 + $0x40] sm:$0xff]  ;;  %v231_v46 = vld [vmem:[%s773_s5 + $0x48] sm:$0xff] }
  0x1e   :  { %385 = vmatmul.mubr.msk.f32.vlgmr.msra.gmra.mrb[0].mxu0 %vm53_vm1, %v41_v16  ;;  %v497_v44 = vpack.c.bf16 %v229_v43, %v228_v42  ;;  %v500_v47 = vpack.c.bf16 %v231_v46, %v230_v45  ;;  %v232_v48 = vld [vmem:[%s773_s5 + $0x50] sm:$0xff]  ;;  %v233_v49 = vld [vmem:[%s773_s5 + $0x58] sm:$0xff]  ;;  %v234_v51 = vld [vmem:[%s773_s5 + $0x60] sm:$0xff] }
  0x1f   :  { %454 = vmatprep.mubr.msk.f32.mxu0 %vm572_vm0, %v573_v1  ;;  %489 = vmatpush3.bf16.msra.mxu0 %v488_v36  ;;  %v503_v50 = vpack.c.bf16 %v233_v49, %v232_v48  ;;  %v235_v52 = vld [vmem:[%s773_s5 + $0x68] sm:$0xff]  ;;  %v333_v54 = vld [vmem:[%s770_s2] ss:$0 sm:$0xff]  ;;  %v236_v59 = vld [vmem:[%s773_s5 + $0x70] sm:$0xff] }
  0x20   :  { %471 = vmatpush3.bf16.msra.mxu1 %v470_v17  ;;  %490 = vmatprep.subr.bf16.mxu0 %v571_v0  ;;  %v506_v53 = vpack.c.bf16 %v235_v52, %v234_v51  ;;  %v237_v60 = vld [vmem:[%s773_s5 + $0x78] sm:$0xff]  ;;  %v335_v62 = vld [vmem:[%s772_s4] ss:$0 sm:$0xff]  ;;  %s574_s5 = smov [#allocation5]  }
  0x21   :  { %472 = vmatprep.subr.bf16.mxu1 %v571_v0  ;;  %v509_v61 = vpack.c.bf16 %v237_v60, %v236_v59  ;;  %v336_v3 = vld [vmem:[%s774_s6] ss:$0 sm:$0xff]  ;;  %s324_s9 = sshll.u32 %s574_s5, 4  ;;  %s325_s9 = int_to_ptr.vmem [resolvable:$true] %s324_s9 }
  0x22   :  { %s542_s4 = scalar_lea.vmem %s325_s9, 128  ;;  %p547_p9 = scmp.lt.s32.totalorder %s325_s9, %s325_s9 }
  0x23   :  { %492 = vmatpush3.bf16.msra.mxu0 %v491_v38  ;;  %p543_p8 = scmp.ne.s32.totalorder %s325_s9, %s542_s4  ;;  %p548_p10 = scmp.lt.s32.totalorder %s542_s4, %s542_s4 }
  0x24   :  { %474 = vmatpush3.bf16.msra.mxu1 %v473_v20  ;;  %493 = vmatprep.subr.bf16.mxu0 %v571_v0 }
  0x25   :  { %475 = vmatprep.subr.bf16.mxu1 %v571_v0  ;;  %p549_p11 = por %p548_p10, %p547_p9 }
  0x27   :  { %495 = vmatpush3.bf16.msra.mxu0 %v494_v41  ;;  %p550_p12 = pnand %p549_p11, %p543_p8 }
  0x28   :  { %477 = vmatpush3.bf16.msra.mxu1 %v476_v23  ;;  %496 = vmatprep.subr.bf16.mxu0 %v571_v0 }
  0x29   :  { %478 = vmatprep.subr.bf16.mxu1 %v571_v0 }
  0x2b   :  { %498 = vmatpush3.bf16.msra.mxu0 %v497_v44 }
  0x2c   :  { %480 = vmatpush3.bf16.msra.mxu1 %v479_v26  ;;  %499 = vmatprep.subr.bf16.mxu0 %v571_v0 }
  0x2d   :  { %481 = vmatprep.subr.bf16.mxu1 %v571_v0 }
  0x2f   :  { %501 = vmatpush3.bf16.msra.mxu0 %v500_v47 }
  0x30   :  { %483 = vmatpush3.bf16.msra.mxu1 %v482_v29  ;;  %502 = vmatprep.subr.bf16.mxu0 %v571_v0 }
  0x31   :  { %484 = vmatprep.subr.bf16.mxu1 %v571_v0 }
  0x33   :  { %504 = vmatpush3.bf16.msra.mxu0 %v503_v50 }
  0x34   :  { %486 = vmatpush3.bf16.msra.mxu1 %v485_v32  ;;  %505 = vmatprep.subr.bf16.mxu0 %v571_v0 }
  0x37   :  { %507 = vmatpush3.bf16.msra.mxu0 %v506_v53 }
  0x38   :  { %508 = vmatprep.subr.bf16.mxu0 %v571_v0 }
  0x3b   :  { %510 = vmatpush3.bf16.msra.mxu0 %v509_v61 }
  0xf1   :  { %v123_v55 = vpop.f32.mrb[0].mxu0 }
  0xf2   :  { %v124_v56 = vadd.f32 %v333_v54, %v123_v55  ;;  %v386_v57 = vpop.f32.mrb[1].mxu0 }
  0xf4   :  { %v127_v58 = vmax.f32 %v124_v56, 0.0 }
  0xf6   :  { %420 = vmatmul.mubr.f32.vlgmr.msra.gmra.mrb[0].mxu1 %v127_v58 }
 0x1c9   :  { %v217_v63 = vpop.f32.mrb[0].mxu1 }
 0x1ca   :  { %v218_v0 = vadd.f32 %v335_v62, %v217_v63  ;;  %v421_v1 = vpop.f32.mrb[1].mxu1 }
 0x1cc   :  { %v221_v2 = vmax.f32 %v218_v0, 0.0 }
 0x1ce   :  { %455 = vmatmul.mubr.f32.vlgmr.msra.gmra.mrb[2].mxu0 %v221_v2 }
 0x2a1   :  { %v311_v4 = vpop.f32.mrb[2].mxu0 }
 0x2a2   :  { %v312_v5 = vadd.f32 %v336_v3, %v311_v4  ;;  %v456_v6 = vpop.f32.mrb[3].mxu0 }
 0x2a4   :  { %518 = vtanh.f32 %v312_v5 }
 0x2ae   :  { %v519_v7 = vpop.eup %518 }
 0x2af   :  { %317 = vst.msk [vmem:[#allocation5] sm:$0xff] %vm316_vm2, %v519_v7 }
 0x2b0   :  { %553 = shalt.err (!%p550_p12)
}
 0x2b1   :  { %s554_s6 = scalar_lea.hbm %s775_s7, 128 }
 0x2b2   :  { %p555_p13 = scmp.ne.s32.totalorder %s775_s7, %s554_s6  ;;  %p558_p0 = scmp.lt.u32.totalorder %s554_s6, %s775_s7 }
 0x2b4   :  { %p560_p1 = pnand %p558_p0, %p555_p13 }
 0x2b6   :  { %563 = shalt.err (!%p560_p1)
}
 0x2b7   :  { %327 = dma.vmem_to_hbm [thread:$0]  %s325_s9, 128, %s775_s7, [#allocation4]  }
 0x2b8   :  { %566 = dma.done.wait [#allocation4], 128  }
 0x2b9   :  { %567 = vsyncadd [#allocation4], 4294967168 }
 0x2ba   :  { %331 = vsyncpa [#allocation3], 1 }
 0x2bb   :  { %332 = vsyncpa [#allocation4], 1 }

</bundles_post_ra>
